<compile_context>
chip_gen: v6e
topology: v6e:2x2x1
jax: 0.10.0
libtpu: 0.0.40
codegen_flags: <defaults>
</compile_context>

<pallas_src>
import jax
import jax.numpy as jnp
from jax.experimental import pallas as pl
from jax.experimental.pallas import tpu as pltpu

IN_F = 24
HID = 60
OUT_F = 1

IN_P = 32    # padded input width  (zero filled)
HID_P = 64   # padded hidden width (so G*HID_P hits the native MXU edge)


def _default_group_size():
    """Models per grid step: G*HID_P should match the MXU edge (128 or 256)."""
    try:
        kind = jax.devices()[0].device_kind.lower()
    except Exception:
        return 4
    if any(t in kind for t in ("v2", "v3", "v4", "v5")):
        return 2   # 2 * 64 = 128-wide MXU generations (v5e etc.)
    return 4       # 4 * 64 = 256-wide MXU (v6e / v7x)


def _mlp_group_kernel(x_ref,
                      w1_ref, b1_ref,
                      w2_ref, b2_ref,
                      w3_ref, b3_ref,
                      w4_ref, b4_ref,
                      o_ref):
    """One grid step == one group of G models.

    x_ref : (batch, IN_P)            f32  (constant index map -> resident)
    w1_ref: (1, IN_P,    G*HID_P)    bf16 column-concatenated per group
    w2/w3 : (1, G*HID_P, G*HID_P)    bf16 block-diagonal per group
    w4_ref: (1, G*HID_P, G)          bf16 stacked per-model heads
    bK_ref: (1, 1, width)            f32
    o_ref : (1, batch, G)            f32  lane-dense model axis
    """
    x = x_ref[...].astype(jnp.bfloat16)
    h = jnp.tanh(jnp.dot(x, w1_ref[0],
                         preferred_element_type=jnp.float32) + b1_ref[0])
    h = jnp.tanh(jnp.dot(h.astype(jnp.bfloat16), w2_ref[0],
                         preferred_element_type=jnp.float32) + b2_ref[0])
    h = jnp.tanh(jnp.dot(h.astype(jnp.bfloat16), w3_ref[0],
                         preferred_element_type=jnp.float32) + b3_ref[0])
    out = jnp.dot(h.astype(jnp.bfloat16), w4_ref[0],
                  preferred_element_type=jnp.float32) + b4_ref[0]
    o_ref[0] = out.astype(o_ref.dtype)


def init_params(key, n_models):
    """Deterministic synthetic init (PyTorch-Linear-style uniform bounds)."""
    dims = [(IN_F, HID), (HID, HID), (HID, HID), (HID, OUT_F)]
    params = []
    for fin, fout in dims:
        kw, kb, key = jax.random.split(key, 3)
        bound = 1.0 / jnp.sqrt(float(fin))
        w = jax.random.uniform(kw, (n_models, fin, fout), jnp.float32, -bound, bound)
        b = jax.random.uniform(kb, (n_models, 1, fout), jnp.float32, -bound, bound)
        params.append((w, b))
    return params


def _pack_params(params, group_size):
    """Pad + regroup per-model parameters into per-group MXU-friendly slabs."""
    (w1, b1), (w2, b2), (w3, b3), (w4, b4) = params
    n_models = w1.shape[0]
    g = group_size
    n_groups = -(-n_models // g)
    n_pad = n_groups * g - n_models

    def pad_m(a):  # pad the model axis with zero "dummy" models
        return jnp.pad(a, ((0, n_pad),) + ((0, 0),) * (a.ndim - 1))

    w1, b1, w2, b2, w3, b3, w4, b4 = map(pad_m, (w1, b1, w2, b2, w3, b3, w4, b4))

    # zero-pad feature dims: 24 -> 32, 60 -> 64 (zeros contribute nothing)
    w1 = jnp.pad(w1, ((0, 0), (0, IN_P - IN_F), (0, HID_P - HID)))
    w2 = jnp.pad(w2, ((0, 0), (0, HID_P - HID), (0, HID_P - HID)))
    w3 = jnp.pad(w3, ((0, 0), (0, HID_P - HID), (0, HID_P - HID)))
    w4 = jnp.pad(w4, ((0, 0), (0, HID_P - HID), (0, 0)))
    b1 = jnp.pad(b1, ((0, 0), (0, 0), (0, HID_P - HID)))
    b2 = jnp.pad(b2, ((0, 0), (0, 0), (0, HID_P - HID)))
    b3 = jnp.pad(b3, ((0, 0), (0, 0), (0, HID_P - HID)))

    eye = jnp.eye(g, dtype=w2.dtype)
    gh = g * HID_P

    # layer 1: input is shared -> concatenate the group's output columns
    w1g = (w1.reshape(n_groups, g, IN_P, HID_P)
             .transpose(0, 2, 1, 3).reshape(n_groups, IN_P, gh))

    # layers 2/3: block-diagonal over the group
    def bdiag(w):
        wg = w.reshape(n_groups, g, HID_P, HID_P)
        return jnp.einsum("ngij,gh->ngihj", wg, eye).reshape(n_groups, gh, gh)

    w2g, w3g = bdiag(w2), bdiag(w3)

    # layer 4: stack the per-model (HID,1) heads into (G*HID_P, G) columns
    w4g = (jnp.einsum("ngi,gh->ngih",
                      w4[..., 0].reshape(n_groups, g, HID_P), eye)
              .reshape(n_groups, gh, g))

    def cat_bias(b, width):
        return b[:, 0, :].reshape(n_groups, g * width)[:, None, :]

    b1g, b2g, b3g = (cat_bias(b, HID_P) for b in (b1, b2, b3))
    b4g = cat_bias(b4, OUT_F)  # (n_groups, 1, g)

    wdt = jnp.bfloat16  # bf16 weight streaming, f32 accumulation on the MXU
    weights = [w1g.astype(wdt), b1g, w2g.astype(wdt), b2g,
               w3g.astype(wdt), b3g, w4g.astype(wdt), b4g]
    return weights, n_groups


def all_models_forward(x, params, group_size=None):
    """Equivalent of AllModels.forward: (batch, IN_F) -> (batch, n_models)."""
    batch = x.shape[0]
    n_models = params[0][0].shape[0]
    g = group_size if group_size is not None else _default_group_size()
    g = max(1, min(g, n_models))

    weights, n_groups = _pack_params(params, g)
    gh = g * HID_P
    x_p = jnp.pad(x, ((0, 0), (0, IN_P - IN_F)))

    in_specs = [
        pl.BlockSpec((batch, IN_P), lambda m: (0, 0)),     # x: stays resident
        pl.BlockSpec((1, IN_P, gh), lambda m: (m, 0, 0)),  # w1 (concat)
        pl.BlockSpec((1, 1, gh), lambda m: (m, 0, 0)),     # b1
        pl.BlockSpec((1, gh, gh), lambda m: (m, 0, 0)),    # w2 (block-diag)
        pl.BlockSpec((1, 1, gh), lambda m: (m, 0, 0)),     # b2
        pl.BlockSpec((1, gh, gh), lambda m: (m, 0, 0)),    # w3 (block-diag)
        pl.BlockSpec((1, 1, gh), lambda m: (m, 0, 0)),     # b3
        pl.BlockSpec((1, gh, g), lambda m: (m, 0, 0)),     # w4 (stacked heads)
        pl.BlockSpec((1, 1, g), lambda m: (m, 0, 0)),      # b4
    ]

    out = pl.pallas_call(
        _mlp_group_kernel,
        out_shape=jax.ShapeDtypeStruct((n_groups, batch, g), jnp.float32),
        grid_spec=pltpu.PrefetchScalarGridSpec(
            num_scalar_prefetch=0,
            grid=(n_groups,),
            in_specs=in_specs,
            out_specs=pl.BlockSpec((1, batch, g), lambda m: (m, 0, 0)),
        ),
        compiler_params=pltpu.CompilerParams(
            dimension_semantics=("parallel",)),  # groups are independent (v7x 2 TCs)
    )(x_p, *weights)

    # (n_groups, batch, G) -> (batch, n_groups*G), drop padded dummy models
    y = jnp.swapaxes(out, 0, 1).reshape(batch, n_groups * g)
    return y[:, :n_models]


def _reference_f32(x, params):
    cols = []
    for m in range(params[0][0].shape[0]):
        h = x
        for li, (w, b) in enumerate(params):
            h = jnp.dot(h, w[m]) + b[m]
            if li < len(params) - 1:
                h = jnp.tanh(h)
        cols.append(h)
    return jnp.concatenate(cols, axis=1)


def _reference_bf16(x, params):
    """Mirrors the kernel's precision: bf16 operands, f32 accumulate / bias."""
    cols = []
    for m in range(params[0][0].shape[0]):
        h = x
        for li, (w, b) in enumerate(params):
            h = jnp.dot(h.astype(jnp.bfloat16), w[m].astype(jnp.bfloat16),
                        preferred_element_type=jnp.float32) + b[m]
            if li < len(params) - 1:
                h = jnp.tanh(h)
        cols.append(h)
    return jnp.concatenate(cols, axis=1)


if __name__ == "__main__":
    key = jax.random.PRNGKey(0)
    kx, kp = jax.random.split(key)

    batch = 8
    n_models = 8

    x = jax.random.normal(kx, (batch, IN_F), jnp.float32)
    params = init_params(kp, n_models)

    y = all_models_forward(x, params)
    y = jax.block_until_ready(y)
    assert y.shape == (batch, n_models), y.shape

    # Tight check against a reference with the same (bf16 weights, f32 acc)
    # precision, plus a loose sanity check against the pure-f32 module math.
    y_bf16 = _reference_bf16(x, params)
    assert jnp.allclose(y, y_bf16, atol=1e-3, rtol=1e-3), "mismatch vs bf16 reference"
    y_f32 = _reference_f32(x, params)
    assert jnp.allclose(y, y_f32, atol=5e-2, rtol=5e-2), "mismatch vs f32 reference"

    print("KERNEL_OK")
</pallas_src>

<mosaic_0001>
module attributes {stable_mosaic.version = 11 : i64} {
  func.func @_mlp_group_kernel(%arg0: i32, %arg1: memref<8x32xf32, #tpu.memory_space<vmem>>, %arg2: memref<1x32x256xbf16, #tpu.memory_space<vmem>>, %arg3: memref<1x1x256xf32, #tpu.memory_space<vmem>>, %arg4: memref<1x256x256xbf16, #tpu.memory_space<vmem>>, %arg5: memref<1x1x256xf32, #tpu.memory_space<vmem>>, %arg6: memref<1x256x256xbf16, #tpu.memory_space<vmem>>, %arg7: memref<1x1x256xf32, #tpu.memory_space<vmem>>, %arg8: memref<1x256x4xbf16, #tpu.memory_space<vmem>>, %arg9: memref<1x1x4xf32, #tpu.memory_space<vmem>>, %arg10: memref<1x8x4xf32, #tpu.memory_space<vmem>>) attributes {dimension_semantics = [#tpu.dimension_semantics<parallel>], iteration_bounds = array<i64: 2>, scalar_prefetch = 0 : i64, scratch_operands = 0 : i64, tpu.core_type = #tpu.core_type<tc>, window_params = [{pipeline_mode = #tpu.pipeline_mode<synchronous>, transform_indices = @transform_0, window_bounds = array<i64: 8, 32>}, {transform_indices = @transform_1, window_bounds = array<i64: 1, 32, 256>}, {transform_indices = @transform_2, window_bounds = array<i64: 1, 1, 256>}, {transform_indices = @transform_3, window_bounds = array<i64: 1, 256, 256>}, {transform_indices = @transform_4, window_bounds = array<i64: 1, 1, 256>}, {transform_indices = @transform_5, window_bounds = array<i64: 1, 256, 256>}, {transform_indices = @transform_6, window_bounds = array<i64: 1, 1, 256>}, {transform_indices = @transform_7, window_bounds = array<i64: 1, 256, 4>}, {transform_indices = @transform_8, window_bounds = array<i64: 1, 1, 4>}, {transform_indices = @transform_9, window_bounds = array<i64: 1, 8, 4>}]} {
    %c0 = arith.constant 0 : index
    %c0_0 = arith.constant 0 : index
    %0 = vector.load %arg1[%c0, %c0_0] : memref<8x32xf32, #tpu.memory_space<vmem>>, vector<8x32xf32>
    %1 = arith.truncf %0 : vector<8x32xf32> to vector<8x32xbf16>
    %c0_1 = arith.constant 0 : index
    %c0_2 = arith.constant 0 : index
    %c0_3 = arith.constant 0 : index
    %2 = vector.load %arg2[%c0_1, %c0_2, %c0_3] : memref<1x32x256xbf16, #tpu.memory_space<vmem>>, vector<1x32x256xbf16>
    %3 = vector.shape_cast %2 : vector<1x32x256xbf16> to vector<32x256xbf16>
    %cst = arith.constant dense<0.000000e+00> : vector<8x256xf32>
    %4 = tpu.matmul %1, %3, %cst {dimension_numbers = #tpu.dot_dimension_numbers<[1], [0], [0], [1], [0, 0, 1, 1], [], []>} : vector<8x32xbf16>, vector<32x256xbf16>, vector<8x256xf32> -> vector<8x256xf32>
    %c0_4 = arith.constant 0 : index
    %c0_5 = arith.constant 0 : index
    %c0_6 = arith.constant 0 : index
    %5 = vector.load %arg3[%c0_4, %c0_5, %c0_6] : memref<1x1x256xf32, #tpu.memory_space<vmem>>, vector<1x1x256xf32>
    %6 = vector.shape_cast %5 : vector<1x1x256xf32> to vector<1x256xf32>
    %7 = vector.broadcast %6 : vector<1x256xf32> to vector<8x256xf32>
    %8 = arith.addf %4, %7 : vector<8x256xf32>
    %9 = math.tanh %8 : vector<8x256xf32>
    %10 = arith.truncf %9 : vector<8x256xf32> to vector<8x256xbf16>
    %c0_7 = arith.constant 0 : index
    %c0_8 = arith.constant 0 : index
    %c0_9 = arith.constant 0 : index
    %11 = vector.load %arg4[%c0_7, %c0_8, %c0_9] : memref<1x256x256xbf16, #tpu.memory_space<vmem>>, vector<1x256x256xbf16>
    %12 = vector.shape_cast %11 : vector<1x256x256xbf16> to vector<256x256xbf16>
    %cst_10 = arith.constant dense<0.000000e+00> : vector<8x256xf32>
    %13 = tpu.matmul %10, %12, %cst_10 {dimension_numbers = #tpu.dot_dimension_numbers<[1], [0], [0], [1], [0, 0, 1, 1], [], []>} : vector<8x256xbf16>, vector<256x256xbf16>, vector<8x256xf32> -> vector<8x256xf32>
    %c0_11 = arith.constant 0 : index
    %c0_12 = arith.constant 0 : index
    %c0_13 = arith.constant 0 : index
    %14 = vector.load %arg5[%c0_11, %c0_12, %c0_13] : memref<1x1x256xf32, #tpu.memory_space<vmem>>, vector<1x1x256xf32>
    %15 = vector.shape_cast %14 : vector<1x1x256xf32> to vector<1x256xf32>
    %16 = vector.broadcast %15 : vector<1x256xf32> to vector<8x256xf32>
    %17 = arith.addf %13, %16 : vector<8x256xf32>
    %18 = math.tanh %17 : vector<8x256xf32>
    %19 = arith.truncf %18 : vector<8x256xf32> to vector<8x256xbf16>
    %c0_14 = arith.constant 0 : index
    %c0_15 = arith.constant 0 : index
    %c0_16 = arith.constant 0 : index
    %20 = vector.load %arg6[%c0_14, %c0_15, %c0_16] : memref<1x256x256xbf16, #tpu.memory_space<vmem>>, vector<1x256x256xbf16>
    %21 = vector.shape_cast %20 : vector<1x256x256xbf16> to vector<256x256xbf16>
    %cst_17 = arith.constant dense<0.000000e+00> : vector<8x256xf32>
    %22 = tpu.matmul %19, %21, %cst_17 {dimension_numbers = #tpu.dot_dimension_numbers<[1], [0], [0], [1], [0, 0, 1, 1], [], []>} : vector<8x256xbf16>, vector<256x256xbf16>, vector<8x256xf32> -> vector<8x256xf32>
    %c0_18 = arith.constant 0 : index
    %c0_19 = arith.constant 0 : index
    %c0_20 = arith.constant 0 : index
    %23 = vector.load %arg7[%c0_18, %c0_19, %c0_20] : memref<1x1x256xf32, #tpu.memory_space<vmem>>, vector<1x1x256xf32>
    %24 = vector.shape_cast %23 : vector<1x1x256xf32> to vector<1x256xf32>
    %25 = vector.broadcast %24 : vector<1x256xf32> to vector<8x256xf32>
    %26 = arith.addf %22, %25 : vector<8x256xf32>
    %27 = math.tanh %26 : vector<8x256xf32>
    %28 = arith.truncf %27 : vector<8x256xf32> to vector<8x256xbf16>
    %c0_21 = arith.constant 0 : index
    %c0_22 = arith.constant 0 : index
    %c0_23 = arith.constant 0 : index
    %29 = vector.load %arg8[%c0_21, %c0_22, %c0_23] : memref<1x256x4xbf16, #tpu.memory_space<vmem>>, vector<1x256x4xbf16>
    %30 = vector.shape_cast %29 : vector<1x256x4xbf16> to vector<256x4xbf16>
    %cst_24 = arith.constant dense<0.000000e+00> : vector<8x4xf32>
    %31 = tpu.matmul %28, %30, %cst_24 {dimension_numbers = #tpu.dot_dimension_numbers<[1], [0], [0], [1], [0, 0, 1, 1], [], []>} : vector<8x256xbf16>, vector<256x4xbf16>, vector<8x4xf32> -> vector<8x4xf32>
    %c0_25 = arith.constant 0 : index
    %c0_26 = arith.constant 0 : index
    %c0_27 = arith.constant 0 : index
    %32 = vector.load %arg9[%c0_25, %c0_26, %c0_27] : memref<1x1x4xf32, #tpu.memory_space<vmem>>, vector<1x1x4xf32>
    %33 = vector.shape_cast %32 : vector<1x1x4xf32> to vector<1x4xf32>
    %34 = vector.broadcast %33 : vector<1x4xf32> to vector<8x4xf32>
    %35 = arith.addf %31, %34 : vector<8x4xf32>
    %c0_28 = arith.constant 0 : index
    %c0_29 = arith.constant 0 : index
    %c0_30 = arith.constant 0 : index
    %36 = vector.load %arg10[%c0_28, %c0_29, %c0_30] : memref<1x8x4xf32, #tpu.memory_space<vmem>>, vector<1x8x4xf32>
    %37 = vector.shape_cast %36 : vector<1x8x4xf32> to vector<8x4xf32>
    %38 = vector.shape_cast %35 : vector<8x4xf32> to vector<1x8x4xf32>
    tpu.vector_store %arg10[%c0_28, %c0_29, %c0_30], %38 {strides = array<i32>} : memref<1x8x4xf32, #tpu.memory_space<vmem>>, vector<1x8x4xf32>,
    return
  }
  func.func @transform_0(%arg0: i32) -> (i32, i32) {
    %c0_i32 = arith.constant 0 : i32
    %c0_i32_0 = arith.constant 0 : i32
    %c0_i32_1 = arith.constant 0 : i32
    return %c0_i32, %c0_i32_0 : i32, i32
  }
  func.func @transform_1(%arg0: i32) -> (i32, i32, i32) {
    %c0_i32 = arith.constant 0 : i32
    %c0_i32_0 = arith.constant 0 : i32
    %c0_i32_1 = arith.constant 0 : i32
    return %arg0, %c0_i32, %c0_i32_0 : i32, i32, i32
  }
  func.func @transform_2(%arg0: i32) -> (i32, i32, i32) {
    %c0_i32 = arith.constant 0 : i32
    %c0_i32_0 = arith.constant 0 : i32
    %c0_i32_1 = arith.constant 0 : i32
    return %arg0, %c0_i32, %c0_i32_0 : i32, i32, i32
  }
  func.func @transform_3(%arg0: i32) -> (i32, i32, i32) {
    %c0_i32 = arith.constant 0 : i32
    %c0_i32_0 = arith.constant 0 : i32
    %c0_i32_1 = arith.constant 0 : i32
    return %arg0, %c0_i32, %c0_i32_0 : i32, i32, i32
  }
  func.func @transform_4(%arg0: i32) -> (i32, i32, i32) {
    %c0_i32 = arith.constant 0 : i32
    %c0_i32_0 = arith.constant 0 : i32
    %c0_i32_1 = arith.constant 0 : i32
    return %arg0, %c0_i32, %c0_i32_0 : i32, i32, i32
  }
  func.func @transform_5(%arg0: i32) -> (i32, i32, i32) {
    %c0_i32 = arith.constant 0 : i32
    %c0_i32_0 = arith.constant 0 : i32
    %c0_i32_1 = arith.constant 0 : i32
    return %arg0, %c0_i32, %c0_i32_0 : i32, i32, i32
  }
  func.func @transform_6(%arg0: i32) -> (i32, i32, i32) {
    %c0_i32 = arith.constant 0 : i32
    %c0_i32_0 = arith.constant 0 : i32
    %c0_i32_1 = arith.constant 0 : i32
    return %arg0, %c0_i32, %c0_i32_0 : i32, i32, i32
  }
  func.func @transform_7(%arg0: i32) -> (i32, i32, i32) {
    %c0_i32 = arith.constant 0 : i32
    %c0_i32_0 = arith.constant 0 : i32
    %c0_i32_1 = arith.constant 0 : i32
    return %arg0, %c0_i32, %c0_i32_0 : i32, i32, i32
  }
  func.func @transform_8(%arg0: i32) -> (i32, i32, i32) {
    %c0_i32 = arith.constant 0 : i32
    %c0_i32_0 = arith.constant 0 : i32
    %c0_i32_1 = arith.constant 0 : i32
    return %arg0, %c0_i32, %c0_i32_0 : i32, i32, i32
  }
  func.func @transform_9(%arg0: i32) -> (i32, i32, i32) {
    %c0_i32 = arith.constant 0 : i32
    %c0_i32_0 = arith.constant 0 : i32
    %c0_i32_1 = arith.constant 0 : i32
    return %arg0, %c0_i32, %c0_i32_0 : i32, i32, i32
  }
}

</mosaic_0001>

<bundles_post_ra>
// kernel: tpu_custom_call.1
= control target key start
LH: loop header
LB: loop body
LE: loop exit
PB: predicated region body
PF: predicated region fallthrough
CT: control target
= control target key end

     0   :  { %s2171_s0 = inlined_call_operand.vmem [shape: f32[8,32], index: 0, kind: input, shape index: {}]   ;;  %s2172_s1 = inlined_call_operand.vmem [shape: bf16[2,32,256], index: 1, kind: input, shape index: {}]   ;;  %s2173_s2 = inlined_call_operand.vmem [shape: f32[2,1,256], index: 2, kind: input, shape index: {}]   ;;  %s2174_s3 = inlined_call_operand.hbm [shape: bf16[2,256,256], index: 3, kind: input, shape index: {}]   ;;  %s2175_s4 = inlined_call_operand.vmem [shape: f32[2,1,256], index: 4, kind: input, shape index: {}]   ;;  %s2176_s5 = inlined_call_operand.hbm [shape: bf16[2,256,256], index: 5, kind: input, shape index: {}]   ;;  %s2177_s6 = inlined_call_operand.vmem [shape: f32[2,1,256], index: 6, kind: input, shape index: {}]   ;;  %s2178_s7 = inlined_call_operand.vmem [shape: bf16[2,256,4], index: 7, kind: input, shape index: {}]   ;;  %s2179_s8 = inlined_call_operand.vmem [shape: f32[2,1,4], index: 8, kind: input, shape index: {}]   ;;  %s2180_s9 = inlined_call_operand.vmem [shape: f32[2,8,4], index: 9, kind: output, shape index: {}]  }
   0x1   :  { %2183 = sst [smem:[#allocation8_spill]] %s2174_s3 }
   0x2   :  { %14 = vsyncpa [#allocation3], 0 }
   0x3   :  { %16 = vsyncpa [#allocation3 + $0x1], 0 }
   0x4   :  { %17 = vsyncpa [#allocation5], 0 }
   0x5   :  { %19 = vsyncpa [#allocation5 + $0x1], 0  ;;  %s1878_s30 = smov 0   ;;  %s1880_s10 = smov 0  }
   0x6   :  { %s1882_s11 = smov 0   ;;  %s1884_s12 = smov 0  }
   0x7 LB: > { %s1897_s13 = sadd.s32 4294967295, %s1821_s12   ;;  %s1900_s14 = sadd.s32 1, %s1821_s12   ;;  %s1821_s12 = sphi %s1884_s12, %s2194_s12   ;;  %s1817_s11 = sphi %s1882_s11, %s2193_s11   ;;  %s1813_s10 = sphi %s1880_s10, %s2192_s10   ;;  %s1809_s30 = sphi %s1878_s30, %s2191_s30  }
   0x8   : > { %s102_s15 = ssub.s32 %s1821_s12, %s1900_s14  ;;  %s105_s16 = sadd.s32 1, %s1817_s11 }
   0x9   : > { %p103_p0 = scmp.eq.s32.totalorder %s102_s15, 0  ;;  %p112_p1 = scmp.ne.s32.totalorder %s1817_s11, %s1813_s10 }
   0xa   : > { %p113_p2 = scmp.eq.s32.totalorder %s1821_s12, 0  ;;  %p118_p3 = scmp.ne.s32.totalorder %s1813_s10, %s1809_s30 }
   0xb   : > { %s1910_s17 = scalar_select %p103_p0, %s1817_s11, %s105_s16  }
   0xc   : > { %p114_p4 = por %p113_p2, %p112_p1  ;;  %p119_p5 = scmp.eq.s32.totalorder %s1897_s13, 0 }
   0xd   : > { %p1561_p6 = scmp.lt.s32.totalorder %s1821_s12, 2  ;;  %s1919_s19 = sand.u32 1, %s1817_s11  }
   0xe   : > { %p1914_p7 = por %p119_p5, %p118_p3  ;;  %s2181_s20 = sshll.u32 %s1919_s19, 8 }
   0xf   : > { %s1524_s21 = sshll.u32 %s1821_s12, 12  ;;  %s2185_s3 = sld [smem:[#allocation8_spill]] }
  0x10   : > { %s2184_s18 = scalar_select %p1914_p7, 1, 0 }
  0x11   : > { %s320_s25 = scalar_lea.vmem [#allocation2], %s2181_s20  ;;  %p1934_p8 = pnand %p1561_p6, %p114_p4 }
  0x12   : > { %s327_s26 = sshll.u32 %s320_s25, 4  ;;  %s317_s28 = scalar_lea.sflag [#allocation3], %s1919_s19  ;;  %s1932_s26 = int_to_ptr.vmem [resolvable:$true] %s327_s26 }
  0x13   : > { %p1729_p11 = pneg %p1934_p8 }
  0x15   : > { %s1928_s24 = scalar_lea.hbm %s2185_s3, %s1524_s21  ;;  %s1732_s16 = scalar_lea.hbm %s2185_s3, 8192 }
  0x16   : > { %s1727_s29 = scalar_lea.hbm %s1928_s24, 4096  ;;  %p1733_p0 = scmp.lt.s32.totalorder %s1928_s24, %s2185_s3 }
  0x17   : > { %p1728_p10 = scmp.ne.s32.totalorder %s1928_s24, %s1727_s29  ;;  %p1734_p1 = scmp.lt.s32.totalorder %s1732_s16, %s1727_s29 }
  0x19   : > { %p1730_p12 = pnand %p1729_p11, %p1728_p10  ;;  %p1735_p2 = por %p1734_p1, %p1733_p0 }
  0x1b   : > { %p1731_p13 = pneg %p1730_p12 }
  0x1d   : > { %p1736_p3 = pnand %p1735_p2, %p1731_p13 }
  0x1f   : > { %1739 = shalt.err (!%p1736_p3)
}
  0x20   : > { %s1740_s25 = scalar_lea.vmem %s1932_s26, 4096  ;;  %s1823_s30 = smov [#allocation2]  }
  0x21   : > { %p1741_p4 = scmp.ne.s32.totalorder %s1932_s26, %s1740_s25  ;;  %s1745_s15 = sshll.u32 %s1823_s30, 4  ;;  %s1746_s15 = int_to_ptr.vmem [resolvable:$false] %s1745_s15 }
  0x22   : > { %s1747_s20 = scalar_lea.vmem %s1746_s15, 8192  ;;  %p1748_p10 = scmp.lt.s32.totalorder %s1932_s26, %s1746_s15 }
  0x23   : > { %p1743_p5 = pnand %p1741_p4, %p1729_p11  ;;  %p1749_p12 = scmp.lt.s32.totalorder %s1747_s20, %s1740_s25 }
  0x25   : > { %p1744_p6 = pneg %p1743_p5  ;;  %p1750_p9 = por %p1749_p12, %p1748_p10 }
  0x27   : > { %p1751_p0 = pnand %p1750_p9, %p1744_p6 }
  0x29   : > { %1754 = shalt.err (!%p1751_p0)
}
  0x2a   : > { %s1824_s29 = smov 128   ;;  %s1825_s16 = smov 8  }
  0x2b   : > { %1557 = dma.hbm_to_vmem [thread:$0]  (!%p1934_p8), %s1928_s24, 4096, %s1932_s26, %s317_s28, %s1824_s29, %s1824_s29, %s1825_s16  }
  0x2c   : > { %p384_p9 = scmp.lt.s32.totalorder %s1821_s12, 3  ;;  %s1975_s23 = scalar_lea.hbm %s2176_s5, %s1524_s21 }
  0x2d   : > { %p2187_p13 = scmp.ge.s32.totalorder %s1821_s12, 1  ;;  %s2189_s30 = sshll.u32 %s1919_s19, 8 }
  0x2e   : > { %s348_s15 = scalar_lea.vmem [#allocation4], %s2189_s30  ;;  %s345_s24 = scalar_lea.sflag [#allocation5], %s1919_s19 }
  0x2f   : > { %p1979_p1 = pnand %p2187_p13, %p384_p9  ;;  %s355_s3 = sshll.u32 %s348_s15, 4  ;;  %s1985_s3 = int_to_ptr.vmem [resolvable:$true] %s355_s3 }
  0x30   : > { %s1755_s26 = scalar_lea.hbm %s1975_s23, 4096  ;;  %s1760_s28 = scalar_lea.hbm %s2176_s5, 8192 }
  0x31   : > { %p1756_p2 = scmp.ne.s32.totalorder %s1975_s23, %s1755_s26  ;;  %p1761_p5 = scmp.lt.s32.totalorder %s1975_s23, %s2176_s5 }
  0x32   : > { %p1762_p6 = scmp.lt.s32.totalorder %s1760_s28, %s1755_s26 }
  0x33   : > { %p1758_p3 = pnand %p1756_p2, %p1729_p11 }
  0x34   : > { %p1763_p10 = por %p1762_p6, %p1761_p5 }
  0x35   : > { %p1759_p4 = pneg %p1758_p3 }
  0x37   : > { %p1764_p12 = pnand %p1763_p10, %p1759_p4 }
  0x39   : > { %1767 = shalt.err (!%p1764_p12)
}
  0x3a   : > { %s1768_s19 = scalar_lea.vmem %s1985_s3, 4096  ;;  %s1826_s30 = smov [#allocation4]  }
  0x3b   : > { %p1769_p0 = scmp.ne.s32.totalorder %s1985_s3, %s1768_s19  ;;  %s1773_s15 = sshll.u32 %s1826_s30, 4  ;;  %s1774_s15 = int_to_ptr.vmem [resolvable:$false] %s1773_s15 }
  0x3c   : > { %s1775_s12 = scalar_lea.vmem %s1774_s15, 8192  ;;  %p1776_p2 = scmp.lt.s32.totalorder %s1985_s3, %s1774_s15 }
  0x3d   : > { %p1771_p9 = pnand %p1769_p0, %p1729_p11  ;;  %p1777_p3 = scmp.lt.s32.totalorder %s1775_s12, %s1768_s19 }
  0x3f   : > { %p1772_p13 = pneg %p1771_p9  ;;  %p1778_p7 = por %p1777_p3, %p1776_p2 }
  0x41   : > { %p1779_p5 = pnand %p1778_p7, %p1772_p13 }
  0x43   : > { %1782 = shalt.err (!%p1779_p5)
}
  0x44   : > { %1560 = dma.hbm_to_vmem [thread:$0]  (!%p1934_p8), %s1975_s23, 4096, %s1985_s3, %s345_s24, %s1824_s29, %s1824_s29, %s1825_s16  }
  0x45   : > { %388 = sbr.rel (%p1979_p1) target bundleno = 933 (0x3a5), region = 56  ;;  %s390_s26 = sand.u32 (!%p1979_p1), 1, %s1813_s10  }
  0x46   : > { %s1426_s21 = sshll.u32 (!%p1979_p1), %s390_s26, 8  ;;  %s391_s28 = scalar_lea.sflag (!%p1979_p1), [#allocation3], %s390_s26 }
  0x47   : > { %s2016_s20 = scalar_lea.vmem (!%p1979_p1), [#allocation2], %s1426_s21  ;;  %p2190_p7 = scmp.ne.s32.totalorder (!%p1979_p1), %s2184_s18, 0 }
  0x4a   : > { %1800 = dma.done.wait (%p2190_p7), %s391_s28, 4096  }
  0x4b   : > { %1802 = vsyncadd (%p2190_p7), %s391_s28, 4294963200  ;;  %s400_s27 = scalar_lea.sflag [#allocation5], %s390_s26  ;;  %s2022_s22 = scalar_lea.vmem [#allocation4], %s1426_s21 }
  0x4c   : > { %1804 = dma.done.wait (%p2190_p7), %s400_s27, 4096  }
  0x4d   : > { %1806 = vsyncadd (%p2190_p7), %s400_s27, 4294963200  ;;  %p467_p8 = scmp.lt.s32.totalorder %s1897_s13, 1  ;;  %v1827_v0 = vmov 0   ;;  %v497_v5 = vld [vmem:[%s2171_s0] sm:$0xff]  ;;  %v1603_v6 = vld [vmem:[%s2016_s20 + $0x74] ss:$8 sps:$4 sm:$0xff]   ;;  %v505_v61 = vlaneseq }
  0x4e   : > { %571 = vmatprep.mubr.bf16.mxu0 %v1827_v0  ;;  %v1605_v7 = vld [vmem:[%s2016_s20 + $0x70] ss:$8 sps:$4 sm:$0xff]   ;;  %788 = vmatprep.subr.bf16.mxu1 %v1603_v6  ;;  %v1606_v8 = vld [vmem:[%s2016_s20 + $0x64] ss:$8 sps:$4 sm:$0xff]   ;;  %v498_v9 = vpack.c.bf16 %v497_v5, %v497_v5  ;;  %v1608_v10 = vld [vmem:[%s2016_s20 + $0x60] ss:$8 sps:$4 sm:$0xff]  }
  0x4f   : > { %s2196_s13 = smov (!%p467_p8, %s1897_s13), 1  ;;  %789 = vmatpush1.bf16.msra.mxu1 %v1605_v7  ;;  %vm535_vm0 = vcmask 261120   ;;  %v1609_v11 = vld [vmem:[%s2016_s20 + $0x54] ss:$8 sps:$4 sm:$0xff]   ;;  %v1611_v12 = vld [vmem:[%s2016_s20 + $0x50] ss:$8 sps:$4 sm:$0xff]  }
  0x50   : > { %s1526_s3 = sshll.u32 %s2196_s13, 5  ;;  %790 = vmatprep.subr.bf16.mxu1 %v1606_v8  ;;  %v1612_v13 = vld [vmem:[%s2016_s20 + $0x44] ss:$8 sps:$4 sm:$0xff]   ;;  %v1614_v14 = vld [vmem:[%s2016_s20 + $0x40] ss:$8 sps:$4 sm:$0xff]   ;;  %s1527_s24 = sshll.u32 %s2196_s13, 7 }
  0x51   : > { %s471_s23 = scalar_lea.vmem %s2172_s1, %s1526_s3  ;;  %v1615_v15 = vld [vmem:[%s2016_s20 + $0x34] ss:$8 sps:$4 sm:$0xff]   ;;  %v1617_v16 = vld [vmem:[%s2016_s20 + $0x30] ss:$8 sps:$4 sm:$0xff]   ;;  %v1618_v17 = vld [vmem:[%s2016_s20 + $0x24] ss:$8 sps:$4 sm:$0xff]   ;;  %s2060_s15 = scalar_lea.vmem %s2178_s7, %s1527_s24 }
  0x52   : > { %v1597_v1 = vld [vmem:[%s471_s23 + $0x14] ss:$8 sps:$4 sm:$0xff]   ;;  %v1599_v2 = vld [vmem:[%s471_s23 + $0x10] ss:$8 sps:$4 sm:$0xff]   ;;  %v1600_v3 = vld [vmem:[%s471_s23 + $0x4] ss:$8 sps:$4 sm:$0xff]   ;;  %s491_s25 = scalar_lea.vmem %s2179_s8, %s2196_s13 }
  0x53   : > { %551 = vmatprep.subr.bf16.mxu0 %v1597_v1  ;;  %v1602_v4 = vld [vmem:[%s471_s23] ss:$8 sps:$4 sm:$0xff]   ;;  %791 = vmatpush1.bf16.msra.mxu1 %v1608_v10  ;;  %v1621_v19 = vld [vmem:[%s2016_s20 + $0x14] ss:$8 sps:$4 sm:$0xff]   ;;  %v1623_v20 = vld [vmem:[%s2016_s20 + $0x10] ss:$8 sps:$4 sm:$0xff]  }
  0x54   : > { %552 = vmatpush1.bf16.msra.mxu0 %v1599_v2  ;;  %792 = vmatprep.subr.bf16.mxu1 %v1609_v11  ;;  %v1620_v18 = vld [vmem:[%s2016_s20 + $0x20] ss:$8 sps:$4 sm:$0xff]   ;;  %v1624_v21 = vld [vmem:[%s2016_s20 + $0x4] ss:$8 sps:$4 sm:$0xff]   ;;  %v1627_v23 = vld [vmem:[%s2016_s20 + $0xf4] ss:$8 sps:$4 sm:$0xff]  }
  0x55   : > { %553 = vmatprep.subr.bf16.mxu0 %v1600_v3  ;;  %v1626_v22 = vld [vmem:[%s2016_s20] ss:$8 sps:$4 sm:$0xff]   ;;  %v1629_v24 = vld [vmem:[%s2016_s20 + $0xf0] ss:$8 sps:$4 sm:$0xff]   ;;  %v1630_v25 = vld [vmem:[%s2016_s20 + $0xe4] ss:$8 sps:$4 sm:$0xff]  }
  0x56   : > { %v1632_v26 = vld [vmem:[%s2016_s20 + $0xe0] ss:$8 sps:$4 sm:$0xff]   ;;  %v1633_v27 = vld [vmem:[%s2016_s20 + $0xd4] ss:$8 sps:$4 sm:$0xff]   ;;  %v1635_v28 = vld [vmem:[%s2016_s20 + $0xd0] ss:$8 sps:$4 sm:$0xff]  }
  0x57   : > { %793 = vmatpush1.bf16.msra.mxu1 %v1611_v12  ;;  %v1636_v29 = vld [vmem:[%s2016_s20 + $0xc4] ss:$8 sps:$4 sm:$0xff]   ;;  %v1638_v30 = vld [vmem:[%s2016_s20 + $0xc0] ss:$8 sps:$4 sm:$0xff]   ;;  %v1639_v31 = vld [vmem:[%s2016_s20 + $0xb4] ss:$8 sps:$4 sm:$0xff]  }
  0x58   : > { %554 = vmatpush1.bf16.msra.mxu0 %v1602_v4  ;;  %794 = vmatprep.subr.bf16.mxu1 %v1612_v13  ;;  %v1641_v32 = vld [vmem:[%s2016_s20 + $0xb0] ss:$8 sps:$4 sm:$0xff]   ;;  %v1642_v33 = vld [vmem:[%s2016_s20 + $0xa4] ss:$8 sps:$4 sm:$0xff]   ;;  %v1644_v34 = vld [vmem:[%s2016_s20 + $0xa0] ss:$8 sps:$4 sm:$0xff]  }
  0x59   : > { %v1645_v35 = vld [vmem:[%s2016_s20 + $0x94] ss:$8 sps:$4 sm:$0xff]   ;;  %v1647_v36 = vld [vmem:[%s2016_s20 + $0x90] ss:$8 sps:$4 sm:$0xff]   ;;  %v1648_v37 = vld [vmem:[%s2016_s20 + $0x84] ss:$8 sps:$4 sm:$0xff]  }
  0x5a   : > { %v1650_v38 = vld [vmem:[%s2016_s20 + $0x80] ss:$8 sps:$4 sm:$0xff]   ;;  %v1651_v39 = vld [vmem:[%s2022_s22 + $0x70] ss:$8 sps:$4 sm:$0xff]   ;;  %v1653_v40 = vld [vmem:[%s2022_s22 + $0x74] ss:$8 sps:$4 sm:$0xff]  }
  0x5b   : > { %1440 = vmatmul.mubr.msk.bf16.vlgmr.msra.gmra.mxu0 %vm535_vm0, %v498_v9  ;;  %795 = vmatpush1.bf16.msra.mxu1 %v1614_v14  ;;  %v1656_v41 = vld [vmem:[%s2022_s22 + $0x64] ss:$8 sps:$4 sm:$0xff]   ;;  %v1654_v42 = vld [vmem:[%s2022_s22 + $0x60] ss:$8 sps:$4 sm:$0xff]   ;;  %v1659_v43 = vld [vmem:[%s2022_s22 + $0x54] ss:$8 sps:$4 sm:$0xff]  }
  0x5c   : > { %796 = vmatprep.subr.bf16.mxu1 %v1615_v15  ;;  %1037 = vmatprep.subr.bf16.mxu0 %v1653_v40  ;;  %v1657_v44 = vld [vmem:[%s2022_s22 + $0x50] ss:$8 sps:$4 sm:$0xff]   ;;  %v1662_v45 = vld [vmem:[%s2022_s22 + $0x44] ss:$8 sps:$4 sm:$0xff]   ;;  %v1660_v46 = vld [vmem:[%s2022_s22 + $0x40] ss:$8 sps:$4 sm:$0xff]  }
  0x5d   : > { %1038 = vmatpush1.bf16.msra.mxu0 %v1651_v39  ;;  %v1665_v47 = vld [vmem:[%s2022_s22 + $0x34] ss:$8 sps:$4 sm:$0xff]   ;;  %v1663_v48 = vld [vmem:[%s2022_s22 + $0x30] ss:$8 sps:$4 sm:$0xff]   ;;  %v1668_v49 = vld [vmem:[%s2022_s22 + $0x24] ss:$8 sps:$4 sm:$0xff]  }
  0x5e   : > { %1039 = vmatprep.subr.bf16.mxu0 %v1656_v41  ;;  %v1666_v50 = vld [vmem:[%s2022_s22 + $0x20] ss:$8 sps:$4 sm:$0xff]   ;;  %v1671_v51 = vld [vmem:[%s2022_s22 + $0x14] ss:$8 sps:$4 sm:$0xff]   ;;  %v1669_v52 = vld [vmem:[%s2022_s22 + $0x10] ss:$8 sps:$4 sm:$0xff]  }
  0x5f   : > { %797 = vmatpush1.bf16.msra.mxu1 %v1617_v16  ;;  %v1674_v53 = vld [vmem:[%s2022_s22 + $0x4] ss:$8 sps:$4 sm:$0xff]   ;;  %v1672_v54 = vld [vmem:[%s2022_s22] ss:$8 sps:$4 sm:$0xff]   ;;  %v1677_v55 = vld [vmem:[%s2022_s22 + $0xf4] ss:$8 sps:$4 sm:$0xff]  }
  0x60   : > { %798 = vmatprep.subr.bf16.mxu1 %v1618_v17  ;;  %v1675_v56 = vld [vmem:[%s2022_s22 + $0xf0] ss:$8 sps:$4 sm:$0xff]   ;;  %v1680_v57 = vld [vmem:[%s2022_s22 + $0xe4] ss:$8 sps:$4 sm:$0xff]   ;;  %v1678_v58 = vld [vmem:[%s2022_s22 + $0xe0] ss:$8 sps:$4 sm:$0xff]  }
  0x61   : > { %1040 = vmatpush1.bf16.msra.mxu0 %v1654_v42  ;;  %v1683_v59 = vld [vmem:[%s2022_s22 + $0xd4] ss:$8 sps:$4 sm:$0xff]   ;;  %v1681_v60 = vld [vmem:[%s2022_s22 + $0xd0] ss:$8 sps:$4 sm:$0xff]   ;;  %s2100_s12 = sshll.u32 %s2196_s13, 1  ;;  %v506_v62 = vshrl.u32 %v505_v61, 7 }
  0x62   : > { %1041 = vmatprep.subr.bf16.mxu0 %v1659_v43  ;;  %s475_s28 = scalar_lea.vmem %s2173_s2, %s2100_s12  ;;  %v1686_v14 = vld [vmem:[%s2022_s22 + $0xc4] ss:$8 sps:$4 sm:$0xff]   ;;  %v1684_v15 = vld [vmem:[%s2022_s22 + $0xc0] ss:$8 sps:$4 sm:$0xff]   ;;  %v1689_v16 = vld [vmem:[%s2022_s22 + $0xb4] ss:$8 sps:$4 sm:$0xff]   ;;  %s479_s3 = scalar_lea.vmem %s2175_s4, %s2100_s12 }
  0x63   : > { %799 = vmatpush1.bf16.msra.mxu1 %v1620_v18  ;;  %v2106_v63 = vsub.s32 0, %v506_v62  ;;  %v503_v0 = vld [vmem:[%s475_s28] sm:$0x3]  ;;  %v2108_v1 = vsub.s32 1, %v506_v62  ;;  %v1687_v17 = vld [vmem:[%s2022_s22 + $0xb0] ss:$8 sps:$4 sm:$0xff]   ;;  %s483_s16 = scalar_lea.vmem %s2177_s6, %s2100_s12 }
  0x64   : > { %800 = vmatprep.subr.bf16.mxu1 %v1621_v19  ;;  %v1692_v18 = vld [vmem:[%s2022_s22 + $0xa4] ss:$8 sps:$4 sm:$0xff]   ;;  %v1690_v19 = vld [vmem:[%s2022_s22 + $0xa0] ss:$8 sps:$4 sm:$0xff]   ;;  %s1435_s24 = sshll.u32 %s2196_s13, 3  ;;  %vm1257_vm1 = vcmask 31744  }
  0x65   : > { %1042 = vmatpush1.bf16.msra.mxu0 %v1657_v44  ;;  %v508_v2 = vrot.slane %v503_v0, %v2106_v63  ;;  %v512_v3 = vrot.slane %v503_v0, %v2108_v1  ;;  %v1705_v43 = vld [vmem:[%s2060_s15 + $0x60] sm:$0xff]  }
  0x66   : > { %1043 = vmatprep.subr.bf16.mxu0 %v1662_v45  ;;  %v1706_v44 = vld [vmem:[%s2060_s15 + $0x20] sm:$0xff]   ;;  %v1707_v45 = vld [vmem:[%s2060_s15 + $0x58] sm:$0xff]  }
  0x67   : > { %801 = vmatpush1.bf16.msra.mxu1 %v1623_v20  ;;  %v1695_v20 = vld [vmem:[%s2022_s22 + $0x94] ss:$8 sps:$4 sm:$0xff]  }
  0x68   : > { %802 = vmatprep.subr.bf16.mxu1 %v1624_v21  ;;  %v1693_v21 = vld [vmem:[%s2022_s22 + $0x90] ss:$8 sps:$4 sm:$0xff]  }
  0x69   : > { %1044 = vmatpush1.bf16.msra.mxu0 %v1660_v46  ;;  %v1708_v46 = vld [vmem:[%s2060_s15 + $0x18] sm:$0xff]  }
  0x6a   : > { %1045 = vmatprep.subr.bf16.mxu0 %v1665_v47  ;;  %v1709_v47 = vld [vmem:[%s2060_s15 + $0x50] sm:$0xff]  }
  0x6b   : > { %803 = vmatpush1.bf16.msra.mxu1 %v1626_v22  ;;  %v1698_v22 = vld [vmem:[%s2022_s22 + $0x84] ss:$8 sps:$4 sm:$0xff]  }
  0x6c   : > { %804 = vmatprep.subr.bf16.mxu1 %v1627_v23  ;;  %v1696_v23 = vld [vmem:[%s2022_s22 + $0x80] ss:$8 sps:$4 sm:$0xff]  }
  0x6d   : > { %1046 = vmatpush1.bf16.msra.mxu0 %v1663_v48  ;;  %v1710_v48 = vld [vmem:[%s2060_s15 + $0x10] sm:$0xff]  }
  0x6e   : > { %1047 = vmatprep.subr.bf16.mxu0 %v1668_v49  ;;  %v1711_v49 = vld [vmem:[%s2060_s15 + $0x48] sm:$0xff]  }
  0x6f   : > { %805 = vmatpush2.bf16.msra.mxu1 %v1629_v24  ;;  %v1699_v24 = vld [vmem:[%s2060_s15 + $0x78] sm:$0xff]  }
  0x70   : > { %806 = vmatprep.subr.bf16.mxu1 %v1630_v25  ;;  %v1700_v25 = vld [vmem:[%s2060_s15 + $0x38] sm:$0xff]  }
  0x71   : > { %1048 = vmatpush1.bf16.msra.mxu0 %v1666_v50  ;;  %v1712_v50 = vld [vmem:[%s2060_s15 + $0x8] sm:$0xff]  }
  0x72   : > { %1049 = vmatprep.subr.bf16.mxu0 %v1671_v51  ;;  %v1713_v51 = vld [vmem:[%s2060_s15 + $0x40] sm:$0xff]  }
  0x73   : > { %807 = vmatpush2.bf16.msra.mxu1 %v1632_v26  ;;  %v1701_v26 = vld [vmem:[%s2060_s15 + $0x70] sm:$0xff]  }
  0x74   : > { %808 = vmatprep.subr.bf16.mxu1 %v1633_v27  ;;  %v1702_v27 = vld [vmem:[%s2060_s15 + $0x30] sm:$0xff]  }
  0x75   : > { %1050 = vmatpush1.bf16.msra.mxu0 %v1669_v52  ;;  %v1714_v52 = vld [vmem:[%s2060_s15] sm:$0xff]  }
  0x76   : > { %1051 = vmatprep.subr.bf16.mxu0 %v1674_v53  ;;  %v865_v53 = vld [vmem:[%s483_s16] sm:$0x3] }
  0x77   : > { %809 = vmatpush2.bf16.msra.mxu1 %v1635_v28  ;;  %v1703_v28 = vld [vmem:[%s2060_s15 + $0x68] sm:$0xff]  }
  0x78   : > { %810 = vmatprep.subr.bf16.mxu1 %v1636_v29  ;;  %v1704_v29 = vld [vmem:[%s2060_s15 + $0x28] sm:$0xff]   ;;  %s495_s15 = scalar_lea.vmem %s2180_s9, %s1435_s24 }
  0x79   : > { %1052 = vmatpush1.bf16.msra.mxu0 %v1672_v54  ;;  %v870_v54 = vrot.slane %v865_v53, %v2106_v63 }
  0x7a   : > { %1053 = vmatprep.subr.bf16.mxu0 %v1677_v55  ;;  %v874_v55 = vrot.slane %v865_v53, %v2108_v1 }
  0x7b   : > { %811 = vmatpush2.bf16.msra.mxu1 %v1638_v30  ;;  %v616_v30 = vld [vmem:[%s479_s3] sm:$0x3] }
  0x7c   : > { %812 = vmatprep.subr.bf16.mxu1 %v1639_v31  ;;  %v621_v31 = vrot.slane %v616_v30, %v2106_v63 }
  0x7d   : > { %1054 = vmatpush2.bf16.msra.mxu0 %v1675_v56 }
  0x7e   : > { %1055 = vmatprep.subr.bf16.mxu0 %v1680_v57 }
  0x7f   : > { %813 = vmatpush2.bf16.msra.mxu1 %v1641_v32  ;;  %v625_v32 = vrot.slane %v616_v30, %v2108_v1  ;;  %v1505_v1 = vld [vmem:[%s491_s25] ss:$0 sm:$0xff] }
  0x80   : > { %814 = vmatprep.subr.bf16.mxu1 %v1642_v33 }
  0x81   : > { %1056 = vmatpush2.bf16.msra.mxu0 %v1678_v58 }
  0x82   : > { %1057 = vmatprep.subr.bf16.mxu0 %v1683_v59 }
  0x83   : > { %815 = vmatpush2.bf16.msra.mxu1 %v1644_v34 }
  0x84   : > { %816 = vmatprep.subr.bf16.mxu1 %v1645_v35 }
  0x85   : > { %1058 = vmatpush2.bf16.msra.mxu0 %v1681_v60 }
  0x86   : > { %1059 = vmatprep.subr.bf16.mxu0 %v1686_v14 }
  0x87   : > { %817 = vmatpush2.bf16.msra.mxu1 %v1647_v36 }
  0x88   : > { %818 = vmatprep.subr.bf16.mxu1 %v1648_v37 }
  0x89   : > { %1060 = vmatpush2.bf16.msra.mxu0 %v1684_v15 }
  0x8a   : > { %1061 = vmatprep.subr.bf16.mxu0 %v1689_v16 }
  0x8b   : > { %819 = vmatpush2.bf16.msra.mxu1 %v1650_v38 }
  0x8c   : > { %1528 = vmatprep.subr.bf16.mxu1 %v1699_v24 }
  0x8d   : > { %1062 = vmatpush2.bf16.msra.mxu0 %v1687_v17 }
  0x8e   : > { %1063 = vmatprep.subr.bf16.mxu0 %v1692_v18 }
  0x91   : > { %1064 = vmatpush2.bf16.msra.mxu0 %v1690_v19 }
  0x92   : > { %1065 = vmatprep.subr.bf16.mxu0 %v1695_v20 }
  0x95   : > { %1066 = vmatpush2.bf16.msra.mxu0 %v1693_v21 }
  0x96   : > { %1067 = vmatprep.subr.bf16.mxu0 %v1698_v22 }
  0x99   : > { %1068 = vmatpush2.bf16.msra.mxu0 %v1696_v23 }
 0x11b   : > { %v573_v4 = vpop.f32.mrf.mxu0 }
 0x11c   : > { %v574_v5 = vadd.f32 %v573_v4, %v508_v2 }
 0x11d   : > { %v575_v6 = vpop.f32.mrf.mxu0 }
 0x11e   : > { %v576_v7 = vadd.f32 %v575_v6, %v512_v3  ;;  %1715 = vtanh.f32 %v574_v5 }
 0x11f   : > { %v577_v8 = vpop.f32.mrf.mxu0 }
 0x120   : > { %1717 = vtanh.f32 %v576_v7 }
 0x121   : > { %v578_v9 = vpop.f32.mrf.mxu0 }
 0x12b   : > { %v1716_v10 = vpop.eup %1715 }
 0x12c   : > { %v582_v13 = vpack.c.bf16 %v1716_v10, %v1716_v10 }
 0x12d   : > { %v1718_v11 = vpop.eup %1717 }
 0x12e   : > { %v583_v12 = vpack.c.bf16 %v1718_v11, %v1718_v11 }
 0x130   : > { %820 = vmatprep.mubr.bf16.mxu1 %v583_v12 }
 0x131   : > { %821 = vmatmul.mubr.bf16.vlgmr.msra.gmra.mxu1 %v582_v13 }
 0x132   : > { %1529 = vmatpush3.bf16.msra.mxu1 %v1700_v25 }
 0x133   : > { %1530 = vmatprep.subr.bf16.mxu1 %v1701_v26 }
 0x136   : > { %1531 = vmatpush3.bf16.msra.mxu1 %v1702_v27 }
 0x137   : > { %1532 = vmatprep.subr.bf16.mxu1 %v1703_v28 }
 0x13a   : > { %1533 = vmatpush3.bf16.msra.mxu1 %v1704_v29 }
 0x13b   : > { %1534 = vmatprep.subr.bf16.mxu1 %v1705_v43 }
 0x13e   : > { %1535 = vmatpush3.bf16.msra.mxu1 %v1706_v44 }
 0x13f   : > { %1536 = vmatprep.subr.bf16.mxu1 %v1707_v45 }
 0x142   : > { %1537 = vmatpush3.bf16.msra.mxu1 %v1708_v46 }
 0x143   : > { %1538 = vmatprep.subr.bf16.mxu1 %v1709_v47 }
 0x146   : > { %1539 = vmatpush3.bf16.msra.mxu1 %v1710_v48 }
 0x147   : > { %1540 = vmatprep.subr.bf16.mxu1 %v1711_v49 }
 0x14a   : > { %1541 = vmatpush3.bf16.msra.mxu1 %v1712_v50 }
 0x14b   : > { %1542 = vmatprep.subr.bf16.mxu1 %v1713_v51 }
 0x14e   : > { %1543 = vmatpush3.bf16.msra.mxu1 %v1714_v52 }
 0x1f1   : > { %v822_v33 = vpop.f32.mrf.mxu1 }
 0x1f2   : > { %v823_v34 = vadd.f32 %v822_v33, %v621_v31 }
 0x1f3   : > { %v824_v35 = vpop.f32.mrf.mxu1 }
 0x1f4   : > { %v825_v36 = vadd.f32 %v824_v35, %v625_v32  ;;  %1719 = vtanh.f32 %v823_v34 }
 0x1f5   : > { %v826_v37 = vpop.f32.mrf.mxu1 }
 0x1f6   : > { %1721 = vtanh.f32 %v825_v36 }
 0x1f7   : > { %v827_v38 = vpop.f32.mrf.mxu1 }
 0x201   : > { %v1720_v39 = vpop.eup %1719 }
 0x202   : > { %v831_v42 = vpack.c.bf16 %v1720_v39, %v1720_v39 }
 0x203   : > { %v1722_v40 = vpop.eup %1721 }
 0x204   : > { %v832_v41 = vpack.c.bf16 %v1722_v40, %v1722_v40 }
 0x206   : > { %1069 = vmatprep.mubr.bf16.mxu0 %v832_v41 }
 0x207   : > { %1070 = vmatmul.mubr.bf16.vlgmr.msra.gmra.mxu0 %v831_v42 }
 0x2c7   : > { %v1071_v56 = vpop.f32.mrf.mxu0 }
 0x2c8   : > { %v1072_v57 = vadd.f32 %v1071_v56, %v870_v54 }
 0x2c9   : > { %v1073_v58 = vpop.f32.mrf.mxu0 }
 0x2ca   : > { %v1074_v59 = vadd.f32 %v1073_v58, %v874_v55  ;;  %1723 = vtanh.f32 %v1072_v57 }
 0x2cb   : > { %v1075_v60 = vpop.f32.mrf.mxu0 }
 0x2cc   : > { %1725 = vtanh.f32 %v1074_v59 }
 0x2cd   : > { %v1076_v61 = vpop.f32.mrf.mxu0 }
 0x2d7   : > { %v1724_v62 = vpop.eup %1723 }
 0x2d8   : > { %v1080_v3 = vpack.c.bf16 %v1724_v62, %v1724_v62 }
 0x2d9   : > { %v1726_v0 = vpop.eup %1725 }
 0x2da   : > { %v1081_v2 = vpack.c.bf16 %v1726_v0, %v1726_v0 }
 0x2dc   : > { %1249 = vmatprep.mubr.bf16.mxu1 %v1081_v2 }
 0x2dd   : > { %1250 = vmatmul.mubr.bf16.vlgmr.msra.gmra.mxu1 %v1080_v3 }
 0x39d   : > { %v1544_v63 = vpop.f32.mrf.mxu1 }
 0x39f   : > { %v1545_v4 = vpop.f32.mrf.mxu1 }
 0x3a0   : > { %v1546_v5 = vadd.f32 %v1545_v4, %v1544_v63 }
 0x3a1   : > { %v1547_v6 = vpop.f32.mrf.mxu1 }
 0x3a2   : > { %v1252_v7 = vadd.f32 %v1546_v5, %v1505_v1 }
 0x3a3   : > { %v1548_v8 = vpop.f32.mrf.mxu1 }
 0x3a4   : > { %1258 = vst.msk [vmem:[%s495_s15] sm:$0xff] %vm1257_vm1, %v1252_v7 }
 0x3a5 PF: > { %p22_p11 = scmp.ge.s32.totalorder %s1900_s14, 4   ;;  %s2191_s30 = smov %s1813_s10 }
 0x3a6   : > { %s2192_s10 = smov %s1817_s11  ;;  %s2193_s11 = smov %s1910_s17 }
 0x3a7   : > { %s2194_s12 = smov %s1900_s14  ;;  %24 = sbr.rel (!%p22_p11) target bundleno = 7 (0x7), region = 127 }
 0x3ac   :  { %1278 = vsyncpa [#allocation3], 1 }
 0x3ad   :  { %1280 = vsyncpa [#allocation3 + $0x1], 1 }
 0x3ae   :  { %1281 = vsyncpa [#allocation5], 1 }
 0x3af   :  { %1283 = vsyncpa [#allocation5 + $0x1], 1 }

</bundles_post_ra>
